<compile_context>
chip_gen: v7x
topology: tpu7x:2x2x1
jax: 0.10.0
libtpu: 0.0.40
codegen_flags: <defaults>
</compile_context>

<pallas_src>
import functools
import math

import jax
import jax.numpy as jnp
from jax.experimental import pallas as pl
from jax.experimental.pallas import tpu as pltpu

_SHIFT = math.log(2.0)
_THRESHOLD = 20.0                        # torch.nn.Softplus default threshold
_LANE = 128
_TARGET_BLOCK_BYTES = 2 * 1024 * 1024    # roofline plateau; x4 when double-buffered -> 8 MiB VMEM
_MIN_BLOCK_BYTES = 1 * 1024 * 1024       # don't shrink blocks below this when splitting


def _shifted_softplus_kernel(x_ref, o_ref):
    x = x_ref[...]
    xf = x.astype(jnp.float32)
    # Numerically stable softplus matching torch.nn.Softplus(beta=1, threshold=20).
    # exp overflow for x > threshold is selected away by the where -- no NaNs.
    # f32 exp+log1p run on the EUP with ample headroom vs. the HBM roofline for
    # f32 I/O.  (If bf16 I/O on v7x ever saturates the EUP slot, a
    # max(x,0)+log1p(exp(-|x|)) bf16-exp variant trades ~1e-3 accuracy for rate.)
    sp = jnp.where(xf > _THRESHOLD, xf, jnp.log1p(jnp.exp(xf)))
    o_ref[...] = (sp - _SHIFT).astype(o_ref.dtype)


@functools.lru_cache(maxsize=1)
def _num_tensorcores() -> int:
    """Best-effort TensorCores-per-device count (v7x / megacore chips have 2)."""
    try:
        dev = jax.devices()[0]
        kind = str(getattr(dev, "device_kind", "")).lower()
        if any(tag in kind for tag in ("v7", "v5p", "v4")):
            return 2
        nc = getattr(dev, "num_cores", None)
        if nc:
            return int(nc)
    except Exception:
        pass
    return 1


def _tile_rows(rows: int, itemsize: int, n_cores: int) -> int:
    """Row tile for a (rows, 128) array: sized in bytes, core-count aware."""
    sub = max(8, 32 // max(1, itemsize))     # packed sublane multiple: f32 8, bf16 16, i8 32
    row_bytes = _LANE * itemsize
    tgt_rows = max(sub, (_TARGET_BLOCK_BYTES // row_bytes) // sub * sub)
    min_rows = max(sub, (_MIN_BLOCK_BYTES // row_bytes) // sub * sub)

    nsteps = pl.cdiv(rows, tgt_rows)
    if n_cores >= 2 and rows >= 2 * sub:
        # Dual-TC chips: even step count so the "parallel" axis splits evenly across
        # both TensorCores; >= 4 steps (2 per core) once blocks can stay >= ~1 MiB so
        # each core's pipeline still overlaps DMA with compute.
        floor_steps = 4 if rows >= 4 * min_rows else 2
        nsteps = max(nsteps, floor_steps)
        nsteps += nsteps & 1
    if nsteps <= 1:
        return rows                           # single full-size block on 1-TC chips
    tr = pl.cdiv(rows, nsteps)
    tr = min(rows, pl.cdiv(tr, sub) * sub)    # round up to the sublane multiple
    return max(sub, tr)


def _call_2d(x2d: jax.Array, tile_rows: int) -> jax.Array:
    rows, lane = x2d.shape
    grid = (pl.cdiv(rows, tile_rows),)        # partial last block handled by the pipeline
    return pl.pallas_call(
        _shifted_softplus_kernel,
        out_shape=jax.ShapeDtypeStruct((rows, lane), x2d.dtype),
        grid_spec=pltpu.PrefetchScalarGridSpec(
            num_scalar_prefetch=0,
            grid=grid,
            in_specs=[pl.BlockSpec((tile_rows, lane), lambda i: (i, 0))],
            out_specs=pl.BlockSpec((tile_rows, lane), lambda i: (i, 0)),
        ),
        # NOTE: input_output_aliases={0: 0} would drop the n-byte output allocation,
        # but it only pays off when callers donate x; left off so non-donated inputs
        # don't pick up a defensive copy.
        compiler_params=pltpu.CompilerParams(
            dimension_semantics=("parallel",),
        ),
    )(x2d)


@jax.jit
def shifted_softplus(x: jax.Array) -> jax.Array:
    """Elementwise shifted softplus: softplus(x) - log(2). Any shape / float dtype."""
    orig_shape = x.shape
    n = x.size
    if n == 0:
        return x
    itemsize = jnp.dtype(x.dtype).itemsize
    n_cores = _num_tensorcores()

    if n % _LANE == 0:
        # Fast path (any size that's a multiple of 128, regardless of dtype):
        # zero-copy lane-dense (rows, 128) view -- no pad, no tail slice.
        rows = n // _LANE
        out2d = _call_2d(jnp.reshape(x, (rows, _LANE)),
                         _tile_rows(rows, itemsize, n_cores))
        return jnp.reshape(out2d, orig_shape)

    # Ragged path (n % 128 != 0): pad by < 128 elements to the next lane boundary.
    # This keeps the guaranteed-dense 2-D Mosaic layout at the price of one extra
    # pad/slice pair; zero-padded elements produce finite values and are sliced off.
    rows = pl.cdiv(n, _LANE)
    pad = rows * _LANE - n
    x2d = jnp.reshape(jnp.pad(jnp.reshape(x, (-1,)), (0, pad)), (rows, _LANE))
    out2d = _call_2d(x2d, _tile_rows(rows, itemsize, n_cores))
    return jnp.reshape(jnp.reshape(out2d, (-1,))[:n], orig_shape)


def _reference(x):
    xf = x.astype(jnp.float32)
    sp = jnp.where(xf > _THRESHOLD, xf, jnp.log1p(jnp.exp(xf)))
    return sp - _SHIFT                       # f32 reference


if __name__ == "__main__":
    key = jax.random.PRNGKey(0)
    k0, k1, k2 = jax.random.split(key, 3)

    # NCHW activation, aligned (zero-copy) path.
    x = jax.random.normal(k0, (2, 4, 16, 16), dtype=jnp.float32) * 5.0
    y = jax.block_until_ready(shifted_softplus(x))
    assert y.shape == x.shape and y.dtype == x.dtype
    assert jnp.allclose(y, _reference(x).astype(x.dtype), atol=1e-5, rtol=1e-5)

    # Ragged size (n % 128 != 0) exercises the padded fallback path.
    x2 = jax.random.normal(k1, (3, 5, 7, 11), dtype=jnp.float32) * 5.0
    y2 = jax.block_until_ready(shifted_softplus(x2))
    assert y2.shape == x2.shape and y2.dtype == x2.dtype
    assert jnp.allclose(y2, _reference(x2).astype(x2.dtype), atol=1e-5, rtol=1e-5)

    # bf16 I/O exercises the byte-sized (dtype-aware) tile selection.
    x3 = jax.random.normal(k2, (2, 4, 16, 16), dtype=jnp.bfloat16) * 5.0
    y3 = jax.block_until_ready(shifted_softplus(x3))
    assert y3.shape == x3.shape and y3.dtype == x3.dtype
    assert jnp.allclose(y3.astype(jnp.float32), _reference(x3), atol=0.1, rtol=0.02)

    print("KERNEL_OK")
</pallas_src>

<mosaic_0001>
module attributes {stable_mosaic.version = 11 : i64} {
  func.func @_shifted_softplus_kernel(%arg0: i32, %arg1: memref<16x128xf32, #tpu.memory_space<vmem>>, %arg2: memref<16x128xf32, #tpu.memory_space<vmem>>) attributes {dimension_semantics = [#tpu.dimension_semantics<parallel>], iteration_bounds = array<i64: 1>, scalar_prefetch = 0 : i64, scratch_operands = 0 : i64, tpu.core_type = #tpu.core_type<tc>, window_params = [{transform_indices = @transform_0, window_bounds = array<i64: 16, 128>}, {transform_indices = @transform_1, window_bounds = array<i64: 16, 128>}]} {
    %c0 = arith.constant 0 : index
    %c0_0 = arith.constant 0 : index
    %0 = vector.load %arg1[%c0, %c0_0] : memref<16x128xf32, #tpu.memory_space<vmem>>, vector<16x128xf32>
    %cst = arith.constant 2.000000e+01 : f32
    %1 = vector.broadcast %cst : f32 to vector<16x128xf32>
    %2 = arith.cmpf ogt, %0, %1 : vector<16x128xf32>
    %3 = math.exp %0 : vector<16x128xf32>
    %4 = math.log1p %3 : vector<16x128xf32>
    %5 = arith.select %2, %0, %4 : vector<16x128xi1>, vector<16x128xf32>
    %cst_1 = arith.constant 0.693147182 : f32
    %6 = vector.broadcast %cst_1 : f32 to vector<16x128xf32>
    %7 = arith.subf %5, %6 : vector<16x128xf32>
    %c0_2 = arith.constant 0 : index
    %c0_3 = arith.constant 0 : index
    %8 = vector.load %arg2[%c0_2, %c0_3] : memref<16x128xf32, #tpu.memory_space<vmem>>, vector<16x128xf32>
    tpu.vector_store %arg2[%c0_2, %c0_3], %7 {strides = array<i32>} : memref<16x128xf32, #tpu.memory_space<vmem>>, vector<16x128xf32>,
    return
  }
  func.func @transform_0(%arg0: i32) -> (i32, i32) {
    %c0_i32 = arith.constant 0 : i32
    %c0_i32_0 = arith.constant 0 : i32
    return %arg0, %c0_i32 : i32, i32
  }
  func.func @transform_1(%arg0: i32) -> (i32, i32) {
    %c0_i32 = arith.constant 0 : i32
    %c0_i32_0 = arith.constant 0 : i32
    return %arg0, %c0_i32 : i32, i32
  }
}

</mosaic_0001>

<bundles_post_ra>
// kernel: shifted_softplus.1
= control target key start
LH: loop header
LB: loop body
LE: loop exit
PB: predicated region body
PF: predicated region fallthrough
CT: control target
= control target key end

     0   :  { %s76_s0 = inlined_call_operand.vmem [shape: f32[16,128], index: 0, kind: input, shape index: {}]   ;;  %s77_s1 = inlined_call_operand.vmem [shape: f32[16,128], index: 1, kind: output, shape index: {}]  }
   0x1   :  { %v8_v0 = vld [vmem:[%s76_s0] sm:$0xff]  ;;  %v9_v1 = vld [vmem:[%s76_s0 + $0x8] sm:$0xff] }
   0x2   :  { %v12_v2 = vmul.f32 1.442695, %v8_v0  ;;  %v14_v3 = vmul.f32 1.442695, %v9_v1  ;;  %vm10_vm1 = vcmp.gt.f32.partialorder %v8_v0, 20.0  ;;  %vm11_vm3 = vcmp.gt.f32.partialorder %v9_v1, 20.0 }
   0x4   :  { %46 = vpow2.f32 %v12_v2 }
   0x5   :  { %48 = vpow2.f32 %v14_v3 }
   0xe   :  { %v47_v4 = vpop.eup %46 }
   0xf   :  { %v49_v5 = vpop.eup %48  ;;  %v16_v6 = vadd.f32 1.0, %v47_v4  ;;  %v19_v8 = vmul.f32 -0.5, %v47_v4  ;;  %v22_v11 = vand.u32 2147483647, %v47_v4 }
  0x10   :  { %v25_v7 = vadd.f32 1.0, %v49_v5  ;;  %v28_v9 = vmul.f32 -0.5, %v49_v5  ;;  %v31_v13 = vand.u32 2147483647, %v49_v5 }
  0x11   :  { %50 = vlog2.f32 %v16_v6  ;;  %v20_v10 = vadd.f32 1.0, %v19_v8  ;;  %vm23_vm0 = vcmp.lt.f32.partialorder %v22_v11, 0.0004427343 }
  0x12   :  { %52 = vlog2.f32 %v25_v7  ;;  %v29_v12 = vadd.f32 1.0, %v28_v9  ;;  %vm32_vm2 = vcmp.lt.f32.partialorder %v31_v13, 0.0004427343 }
  0x13   :  { %v21_v14 = vmul.f32 %v47_v4, %v20_v10 }
  0x14   :  { %v30_v16 = vmul.f32 %v49_v5, %v29_v12 }
  0x1b   :  { %v51_v15 = vpop.eup %50 }
  0x1c   :  { %v53_v17 = vpop.eup %52  ;;  %v18_v18 = vmul.f32 0.6931472, %v51_v15 }
  0x1d   :  { %v27_v19 = vmul.f32 0.6931472, %v53_v17 }
  0x1e   :  { %v24_v20 = vsel %vm23_vm0, %v21_v14, %v18_v18 }
  0x1f   :  { %v34_v21 = vsel %vm10_vm1, %v8_v0, %v24_v20  ;;  %v33_v22 = vsel %vm32_vm2, %v30_v16, %v27_v19 }
  0x20   :  { %v44_v23 = vadd.f32 -0.6931472, %v34_v21  ;;  %v35_v24 = vsel %vm11_vm3, %v9_v1, %v33_v22 }
  0x21   :  { %v45_v25 = vadd.f32 -0.6931472, %v35_v24 }
  0x22   :  { %38 = vst [vmem:[%s77_s1] sm:$0xff] %v44_v23 }
  0x23   :  { %39 = vst [vmem:[%s77_s1 + $0x8] sm:$0xff] %v45_v25 }

</bundles_post_ra>
